<compile_context>
chip_gen: v7x
topology: tpu7x:2x2x1
jax: 0.10.0
libtpu: 0.0.40
codegen_flags: <defaults>
</compile_context>

<pallas_src>
import functools

import jax
import jax.numpy as jnp
from jax import lax
from jax.experimental import pallas as pl
from jax.experimental.pallas import tpu as pltpu

_VMEM_LIMIT = 40 * 1024 * 1024
_BN_ROW_TILE = 1024


def _cdiv(a, b):
    return -(-a // b)


def _round_up(x, m):
    return (x + m - 1) // m * m


def _cparams(dims):
    return pltpu.CompilerParams(dimension_semantics=dims,
                                vmem_limit_bytes=_VMEM_LIMIT)


# ----------------------------- tiled MXU matmul -----------------------------

def _matmul_kernel(a_ref, b_ref, o_ref, acc_ref):
    @pl.when(pl.program_id(2) == 0)
    def _():
        acc_ref[...] = jnp.zeros_like(acc_ref)

    acc_ref[...] += jnp.dot(a_ref[...], b_ref[...],
                            preferred_element_type=jnp.float32)

    @pl.when(pl.program_id(2) == pl.num_programs(2) - 1)
    def _():
        o_ref[...] = acc_ref[...].astype(o_ref.dtype)


def pallas_matmul(a, b, out_dtype=jnp.float32):
    """(M, K) @ (K, N) in bf16 on the MXU with f32 accumulation."""
    M, K = a.shape
    K2, N = b.shape
    assert K == K2
    a = a.astype(jnp.bfloat16)
    b = b.astype(jnp.bfloat16)
    tm = min(512, _round_up(M, 16))
    tn = min(512, _round_up(N, 128))
    tk = min(512, _round_up(K, 128))
    Mp, Kp, Np = _round_up(M, tm), _round_up(K, tk), _round_up(N, tn)
    if (Mp, Kp) != (M, K):
        a = jnp.pad(a, ((0, Mp - M), (0, Kp - K)))
    if (Kp, Np) != (K, N):
        b = jnp.pad(b, ((0, Kp - K), (0, Np - N)))
    out = pl.pallas_call(
        _matmul_kernel,
        out_shape=jax.ShapeDtypeStruct((Mp, Np), out_dtype),
        grid_spec=pltpu.PrefetchScalarGridSpec(
            num_scalar_prefetch=0,
            grid=(Mp // tm, Np // tn, Kp // tk),
            in_specs=[pl.BlockSpec((tm, tk), lambda i, j, k: (i, k)),
                      pl.BlockSpec((tk, tn), lambda i, j, k: (k, j))],
            out_specs=pl.BlockSpec((tm, tn), lambda i, j, k: (i, j)),
            scratch_shapes=[pltpu.VMEM((tm, tn), jnp.float32)]),
        compiler_params=_cparams(("parallel", "parallel", "arbitrary")),
    )(a, b)
    if (Mp, Np) != (M, N):
        out = out[:M, :N]
    return out


# -------------------- direct Conv3d (spatial stride == 1) --------------------
#
# The padded input plane for one (n, t_in) is DMA'd once per grid step and kept in
# VMEM; each (ih, iw) tap is a contiguous row-slab of the flattened (H*W) plane that
# feeds a (Ho*Wp, Cin) @ (Cin, Cout) MXU matmul, accumulated in an f32 VMEM scratch.
# Temporal taps (and temporal stride) form the innermost "arbitrary" grid axis.

def _conv_s1_kernel(x_ref, w_ref, o_ref, acc_ref, *, kh, kw, ho, wo, wp):
    it = pl.program_id(2)

    @pl.when(it == 0)
    def _():
        acc_ref[...] = jnp.zeros_like(acc_ref)

    m = ho * wp
    for ih in range(kh):
        for iw in range(kw):
            s = ih * wp + iw
            a = x_ref[0, 0, s:s + m, :]                 # (Ho*Wp, Cin) bf16 slab
            wt = w_ref[0, ih * kw + iw, :, :]           # (Cin, Cout)  bf16
            acc_ref[...] += jnp.dot(a, wt, preferred_element_type=jnp.float32)

    @pl.when(it == pl.num_programs(2) - 1)
    def _():
        for h in range(ho):                             # drop the Wp-strided pad columns
            o_ref[0, 0, h, :, :] = acc_ref[h * wp:h * wp + wo, :].astype(o_ref.dtype)


def conv3d_direct(x, w, stride_t, padding):
    """x: (N,T,H,W,Cin); w: (kT,kH,kW,Cin,Cout); spatial stride 1, temporal stride st."""
    kT, kH, kW, Cin, Cout = w.shape
    pt, ph, pw = padding
    N, T, H, W, _ = x.shape
    Hp, Wp = H + 2 * ph, W + 2 * pw
    Ho, Wo = Hp - kH + 1, Wp - kW + 1
    Tp = T + 2 * pt
    To = (Tp - kT) // stride_t + 1

    x = x.astype(jnp.bfloat16)
    if pt or ph or pw:
        x = jnp.pad(x, ((0, 0), (pt, pt), (ph, ph), (pw, pw), (0, 0)))
    xf = x.reshape(N, Tp, Hp * Wp, Cin)
    if kW > 1:
        xf = jnp.pad(xf, ((0, 0), (0, 0), (0, kW - 1), (0, 0)))
    R = Hp * Wp + kW - 1
    wf = w.astype(jnp.bfloat16).reshape(kT, kH * kW, Cin, Cout)

    kern = functools.partial(_conv_s1_kernel, kh=kH, kw=kW, ho=Ho, wo=Wo, wp=Wp)
    out = pl.pallas_call(
        kern,
        out_shape=jax.ShapeDtypeStruct((N, To, Ho, Wo, Cout), jnp.bfloat16),
        grid_spec=pltpu.PrefetchScalarGridSpec(
            num_scalar_prefetch=0,
            grid=(N, To, kT),
            in_specs=[
                pl.BlockSpec((1, 1, R, Cin),
                             lambda n, t, it: (n, t * stride_t + it, 0, 0)),
                pl.BlockSpec((1, kH * kW, Cin, Cout),
                             lambda n, t, it: (it, 0, 0, 0)),
            ],
            out_specs=pl.BlockSpec((1, 1, Ho, Wo, Cout),
                                   lambda n, t, it: (n, t, 0, 0, 0)),
            scratch_shapes=[pltpu.VMEM((Ho * Wp, Cout), jnp.float32)]),
        compiler_params=_cparams(("parallel", "parallel", "arbitrary")),
    )(xf, wf)
    return out


# ------------------ fallback conv paths (spatially strided) ------------------

def conv3d_im2col(x, w, stride, padding):
    # TODO(synk): patch extraction for the 4 spatially-strided convs stays in plain-JAX
    # im2col glue; the contraction still runs on the MXU via the Pallas matmul.
    kT, kH, kW, Cin, Cout = w.shape
    st, sh, sw = stride
    pt, ph, pw = padding
    x = x.astype(jnp.bfloat16)
    xp = jnp.pad(x, ((0, 0), (pt, pt), (ph, ph), (pw, pw), (0, 0)))
    N, Tp, Hp, Wp, _ = xp.shape
    To = (Tp - kT) // st + 1
    Ho = (Hp - kH) // sh + 1
    Wo = (Wp - kW) // sw + 1
    patches = []
    for it in range(kT):
        for ih in range(kH):
            for iw in range(kW):
                patches.append(
                    xp[:, it:it + (To - 1) * st + 1:st,
                          ih:ih + (Ho - 1) * sh + 1:sh,
                          iw:iw + (Wo - 1) * sw + 1:sw, :])
    cols = jnp.concatenate(patches, axis=-1)
    a = cols.reshape(N * To * Ho * Wo, kT * kH * kW * Cin)
    b = w.reshape(kT * kH * kW * Cin, Cout)
    out = pallas_matmul(a, b, out_dtype=jnp.bfloat16)
    return out.reshape(N, To, Ho, Wo, Cout)


def conv3d(x, w, stride, padding):
    kT, kH, kW, Cin, Cout = w.shape
    st, sh, sw = stride
    if sh == 1 and sw == 1:
        return conv3d_direct(x, w, st, padding)
    if kT == 1 and kH == 1 and kW == 1 and padding == (0, 0, 0):
        # strided 1x1x1 downsample: decimate (no tap blow-up) + channel matmul
        xd = x[:, ::st, ::sh, ::sw, :]
        N, To, Ho, Wo, _ = xd.shape
        out = pallas_matmul(xd.reshape(-1, Cin), w.reshape(Cin, Cout),
                            out_dtype=jnp.bfloat16)
        return out.reshape(N, To, Ho, Wo, Cout)
    return conv3d_im2col(x, w, stride, padding)


# --------------------- BatchNorm (train mode) + act kernels ---------------------

def _bn_stats_kernel(x_ref, sum_ref, ssq_ref, *, m_total, tm):
    i = pl.program_id(0)

    @pl.when(i == 0)
    def _():
        sum_ref[...] = jnp.zeros_like(sum_ref)
        ssq_ref[...] = jnp.zeros_like(ssq_ref)

    x = x_ref[...].astype(jnp.float32)
    if m_total % tm != 0:
        rows = lax.broadcasted_iota(jnp.int32, x.shape, 0) + i * tm
        x = jnp.where(rows < m_total, x, 0.0)
    sum_ref[...] += jnp.sum(x, axis=0, keepdims=True)
    ssq_ref[...] += jnp.sum(x * x, axis=0, keepdims=True)


def _bn_apply_kernel(x_ref, scale_ref, bias_ref, o_ref, *, relu):
    y = x_ref[...].astype(jnp.float32) * scale_ref[...] + bias_ref[...]
    if relu:
        y = jnp.maximum(y, 0.0)
    o_ref[...] = y.astype(o_ref.dtype)


def _bn_apply_res_kernel(x_ref, scale_ref, bias_ref, res_ref, o_ref, *, relu):
    y = (x_ref[...].astype(jnp.float32) * scale_ref[...] + bias_ref[...]
         + res_ref[...].astype(jnp.float32))
    if relu:
        y = jnp.maximum(y, 0.0)
    o_ref[...] = y.astype(o_ref.dtype)


def batchnorm_act(x, gamma, beta, residual=None, relu=True, eps=1e-5):
    """Training-mode BatchNorm over all-but-last axis + optional residual + ReLU."""
    orig_shape = x.shape
    C = orig_shape[-1]
    x2 = x.reshape(-1, C)
    M = x2.shape[0]
    tm = M if M <= _BN_ROW_TILE else _BN_ROW_TILE
    grid = (_cdiv(M, tm),)
    row_spec = pl.BlockSpec((tm, C), lambda i: (i, 0))
    vec_spec = pl.BlockSpec((1, C), lambda i: (0, 0))

    # single fused pass over x for batch statistics
    s, sq = pl.pallas_call(
        functools.partial(_bn_stats_kernel, m_total=M, tm=tm),
        out_shape=(jax.ShapeDtypeStruct((1, C), jnp.float32),
                   jax.ShapeDtypeStruct((1, C), jnp.float32)),
        grid_spec=pltpu.PrefetchScalarGridSpec(
            num_scalar_prefetch=0,
            grid=grid,
            in_specs=[row_spec],
            out_specs=(vec_spec, vec_spec)),
        compiler_params=_cparams(("arbitrary",)),
    )(x2)

    # TODO(synk): tiny per-channel finalization (mean/var -> scale/bias) stays in JAX.
    mean = s / M
    var = jnp.maximum(sq / M - mean * mean, 0.0)     # biased var (PyTorch train mode)
    inv = gamma[None, :] * lax.rsqrt(var + eps)
    scale = inv
    bias = beta[None, :] - mean * inv

    if residual is None:
        kern = functools.partial(_bn_apply_kernel, relu=relu)
        ins = (x2, scale, bias)
        in_specs = [row_spec, vec_spec, vec_spec]
    else:
        kern = functools.partial(_bn_apply_res_kernel, relu=relu)
        ins = (x2, scale, bias, residual.reshape(-1, C))
        in_specs = [row_spec, vec_spec, vec_spec, row_spec]

    out = pl.pallas_call(
        kern,
        out_shape=jax.ShapeDtypeStruct((M, C), x.dtype),
        grid_spec=pltpu.PrefetchScalarGridSpec(
            num_scalar_prefetch=0,
            grid=grid,
            in_specs=in_specs,
            out_specs=row_spec),
        compiler_params=_cparams(("parallel",)),
    )(*ins)
    return out.reshape(orig_shape)


# ------------------------------- L2 normalize -------------------------------

def _l2norm_kernel(x_ref, o_ref):
    x = x_ref[...]
    s = jnp.sum(x * x, axis=-1, keepdims=True)
    # x * rsqrt(max(s, 1e-24)) == x / max(||x||, 1e-12)  (matches F.normalize eps)
    o_ref[...] = x * lax.rsqrt(jnp.maximum(s, 1e-24))


def l2_normalize(x):
    M, D = x.shape
    return pl.pallas_call(
        _l2norm_kernel,
        out_shape=jax.ShapeDtypeStruct((M, D), jnp.float32),
        grid_spec=pltpu.PrefetchScalarGridSpec(
            num_scalar_prefetch=0,
            grid=(1,),
            in_specs=[pl.BlockSpec((M, D), lambda i: (0, 0))],
            out_specs=pl.BlockSpec((M, D), lambda i: (0, 0))),
        compiler_params=_cparams(("arbitrary",)),
    )(x.astype(jnp.float32))


# -------------------------------- parameters --------------------------------

def _midplanes(cin, cout):
    return (cin * cout * 3 * 3 * 3) // (cin * 3 * 3 + 3 * cout)


def make_params(feature_dim=256, seed=0):
    key = jax.random.PRNGKey(seed)
    counter = [0]

    def next_key():
        counter[0] += 1
        return jax.random.fold_in(key, counter[0])

    def conv_w(kT, kH, kW, cin, cout):
        fan_in = kT * kH * kW * cin
        return (jax.random.normal(next_key(), (kT, kH, kW, cin, cout), jnp.float32)
                * (2.0 / fan_in) ** 0.5)

    def bn_p(c):
        return {"gamma": jnp.ones((c,), jnp.float32),
                "beta": jnp.zeros((c,), jnp.float32)}

    params = {}
    # R(2+1)D stem: (1,7,7)/s(1,2,2) 3->45, BN, ReLU, (3,1,1) 45->64, BN, ReLU
    params["stem"] = {
        "conv_s": conv_w(1, 7, 7, 3, 45), "bn_s": bn_p(45),
        "conv_t": conv_w(3, 1, 1, 45, 64), "bn_t": bn_p(64),
    }

    layer_cfg = [(64, 64, 1), (64, 128, 2), (128, 256, 2), (256, 512, 2)]
    layers = []
    for cin, cout, stride in layer_cfg:
        blocks = []
        for bi in range(2):
            b_cin = cin if bi == 0 else cout
            b_stride = stride if bi == 0 else 1
            mid = _midplanes(b_cin, cout)
            block = {
                "stride": b_stride,
                "conv1_s": conv_w(1, 3, 3, b_cin, mid), "bn1_s": bn_p(mid),
                "conv1_t": conv_w(3, 1, 1, mid, cout), "bn1": bn_p(cout),
                "conv2_s": conv_w(1, 3, 3, cout, mid), "bn2_s": bn_p(mid),
                "conv2_t": conv_w(3, 1, 1, mid, cout), "bn2": bn_p(cout),
            }
            if b_stride != 1 or b_cin != cout:
                block["ds_conv"] = conv_w(1, 1, 1, b_cin, cout)
                block["ds_bn"] = bn_p(cout)
            blocks.append(block)
        layers.append(blocks)
    params["layers"] = layers

    # projection head g: Linear(512,512,no bias) -> BN1d -> ReLU -> Linear(512,feature_dim)
    params["g"] = {
        "w1": jax.random.normal(next_key(), (512, 512), jnp.float32) * (1.0 / 512) ** 0.5,
        "bn": bn_p(512),
        "w2": jax.random.normal(next_key(), (512, feature_dim), jnp.float32) * (1.0 / 512) ** 0.5,
        "b2": jnp.zeros((feature_dim,), jnp.float32),
    }
    return params


# ---------------------------------- forward ----------------------------------

def _basic_block(x, p):
    s = p["stride"]
    # conv1 = Conv2Plus1D(spatial conv, BN, ReLU, temporal conv) -> BN -> ReLU
    out = conv3d(x, p["conv1_s"], (1, s, s), (0, 1, 1))
    out = batchnorm_act(out, p["bn1_s"]["gamma"], p["bn1_s"]["beta"], relu=True)
    out = conv3d(out, p["conv1_t"], (s, 1, 1), (1, 0, 0))
    out = batchnorm_act(out, p["bn1"]["gamma"], p["bn1"]["beta"], relu=True)
    # conv2 = Conv2Plus1D -> BN (ReLU fused with residual add below)
    out = conv3d(out, p["conv2_s"], (1, 1, 1), (0, 1, 1))
    out = batchnorm_act(out, p["bn2_s"]["gamma"], p["bn2_s"]["beta"], relu=True)
    out = conv3d(out, p["conv2_t"], (1, 1, 1), (1, 0, 0))
    # residual path
    if "ds_conv" in p:
        res = conv3d(x, p["ds_conv"], (s, s, s), (0, 0, 0))
        res = batchnorm_act(res, p["ds_bn"]["gamma"], p["ds_bn"]["beta"], relu=False)
    else:
        res = x
    # BN2 + residual add + ReLU fused in one Pallas kernel
    out = batchnorm_act(out, p["bn2"]["gamma"], p["bn2"]["beta"],
                        residual=res, relu=True)
    return out


def forward(params, x_ncthw):
    # NCTHW (PyTorch) -> NTHWC (channels-last internal layout)
    x = jnp.transpose(x_ncthw, (0, 2, 3, 4, 1)).astype(jnp.float32)

    p = params["stem"]
    x = conv3d(x, p["conv_s"], (1, 2, 2), (0, 3, 3))
    x = batchnorm_act(x, p["bn_s"]["gamma"], p["bn_s"]["beta"], relu=True)
    x = conv3d(x, p["conv_t"], (1, 1, 1), (1, 0, 0))
    x = batchnorm_act(x, p["bn_t"]["gamma"], p["bn_t"]["beta"], relu=True)

    for blocks in params["layers"]:
        for bp in blocks:
            x = _basic_block(x, bp)

    # TODO(synk): AdaptiveAvgPool3d(1) + flatten stays in plain JAX (tiny reduction).
    feature = jnp.mean(x.astype(jnp.float32), axis=(1, 2, 3))  # (N, 512)

    g = params["g"]
    h = pallas_matmul(feature, g["w1"])                                 # Linear(512,512)
    h = batchnorm_act(h, g["bn"]["gamma"], g["bn"]["beta"], relu=True)  # BN1d + ReLU
    out = pallas_matmul(h, g["w2"]) + g["b2"][None, :]                  # Linear(512,fd)

    return l2_normalize(feature), l2_normalize(out)


# ------------------------------------ main ------------------------------------

if __name__ == "__main__":
    feature_dim = 256
    params = make_params(feature_dim=feature_dim, seed=0)
    # small video input consistent with r2plus1d_18: (N, C=3, T, H, W)
    x = jax.random.normal(jax.random.PRNGKey(0), (2, 3, 4, 16, 16), jnp.float32)

    feat_n, out_n = forward(params, x)
    jax.block_until_ready((feat_n, out_n))

    assert feat_n.shape == (2, 512), feat_n.shape
    assert out_n.shape == (2, feature_dim), out_n.shape
    assert bool(jnp.all(jnp.isfinite(feat_n))) and bool(jnp.all(jnp.isfinite(out_n)))
    print("KERNEL_OK")
</pallas_src>

<mosaic_0001>
module attributes {stable_mosaic.version = 11 : i64} {
  func.func @_matmul_kernel(%arg0: i32, %arg1: i32, %arg2: i32, %arg3: memref<512x256xbf16, #tpu.memory_space<vmem>>, %arg4: memref<256x128xbf16, #tpu.memory_space<vmem>>, %arg5: memref<512x128xbf16, #tpu.memory_space<vmem>>, %arg6: memref<512x128xf32, #tpu.memory_space<vmem>>) attributes {dimension_semantics = [#tpu.dimension_semantics<parallel>, #tpu.dimension_semantics<parallel>, #tpu.dimension_semantics<arbitrary>], iteration_bounds = array<i64: 1, 1, 1>, scalar_prefetch = 0 : i64, scratch_operands = 1 : i64, tpu.core_type = #tpu.core_type<tc>, window_params = [{transform_indices = @transform_0, window_bounds = array<i64: 512, 256>}, {transform_indices = @transform_1, window_bounds = array<i64: 256, 128>}, {transform_indices = @transform_2, window_bounds = array<i64: 512, 128>}]} {
    %c0_i32 = arith.constant 0 : i32
    %0 = arith.cmpi eq, %arg2, %c0_i32 : i32
    %1 = arith.extui %0 : i1 to i32
    %c0_i32_0 = arith.constant 0 : i32
    %2 = arith.cmpi ne, %1, %c0_i32_0 : i32
    scf.if %2 {
      %cst_10 = arith.constant 0.000000e+00 : f32
      %12 = vector.broadcast %cst_10 : f32 to vector<512x128xf32>
      %c0_11 = arith.constant 0 : index
      %c0_12 = arith.constant 0 : index
      %13 = vector.load %arg6[%c0_11, %c0_12] : memref<512x128xf32, #tpu.memory_space<vmem>>, vector<512x128xf32>
      tpu.vector_store %arg6[%c0_11, %c0_12], %12 {strides = array<i32>} : memref<512x128xf32, #tpu.memory_space<vmem>>, vector<512x128xf32>,
    } else {
    }
    %c0 = arith.constant 0 : index
    %c0_1 = arith.constant 0 : index
    %3 = vector.load %arg6[%c0, %c0_1] : memref<512x128xf32, #tpu.memory_space<vmem>>, vector<512x128xf32>
    %c0_2 = arith.constant 0 : index
    %c0_3 = arith.constant 0 : index
    %4 = vector.load %arg3[%c0_2, %c0_3] : memref<512x256xbf16, #tpu.memory_space<vmem>>, vector<512x256xbf16>
    %c0_4 = arith.constant 0 : index
    %c0_5 = arith.constant 0 : index
    %5 = vector.load %arg4[%c0_4, %c0_5] : memref<256x128xbf16, #tpu.memory_space<vmem>>, vector<256x128xbf16>
    %cst = arith.constant dense<0.000000e+00> : vector<512x128xf32>
    %6 = tpu.matmul %4, %5, %cst {dimension_numbers = #tpu.dot_dimension_numbers<[1], [0], [0], [1], [0, 0, 1, 1], [], []>} : vector<512x256xbf16>, vector<256x128xbf16>, vector<512x128xf32> -> vector<512x128xf32>
    %7 = arith.addf %3, %6 : vector<512x128xf32>
    %c0_6 = arith.constant 0 : index
    %c0_7 = arith.constant 0 : index
    %8 = vector.load %arg6[%c0_6, %c0_7] : memref<512x128xf32, #tpu.memory_space<vmem>>, vector<512x128xf32>
    tpu.vector_store %arg6[%c0_6, %c0_7], %7 {strides = array<i32>} : memref<512x128xf32, #tpu.memory_space<vmem>>, vector<512x128xf32>,
    %c0_i32_8 = arith.constant 0 : i32
    %9 = arith.cmpi eq, %arg2, %c0_i32_8 : i32
    %10 = arith.extui %9 : i1 to i32
    %c0_i32_9 = arith.constant 0 : i32
    %11 = arith.cmpi ne, %10, %c0_i32_9 : i32
    scf.if %11 {
      %c0_10 = arith.constant 0 : index
      %c0_11 = arith.constant 0 : index
      %12 = vector.load %arg6[%c0_10, %c0_11] : memref<512x128xf32, #tpu.memory_space<vmem>>, vector<512x128xf32>
      %13 = arith.truncf %12 : vector<512x128xf32> to vector<512x128xbf16>
      %c0_12 = arith.constant 0 : index
      %c0_13 = arith.constant 0 : index
      %14 = vector.load %arg5[%c0_12, %c0_13] : memref<512x128xbf16, #tpu.memory_space<vmem>>, vector<512x128xbf16>
      tpu.vector_store %arg5[%c0_12, %c0_13], %13 {strides = array<i32>} : memref<512x128xbf16, #tpu.memory_space<vmem>>, vector<512x128xbf16>,
    } else {
    }
    return
  }
  func.func @transform_0(%arg0: i32, %arg1: i32, %arg2: i32) -> (i32, i32) {
    %c0_i32 = arith.constant 0 : i32
    return %arg0, %arg2 : i32, i32
  }
  func.func @transform_1(%arg0: i32, %arg1: i32, %arg2: i32) -> (i32, i32) {
    %c0_i32 = arith.constant 0 : i32
    return %arg2, %arg1 : i32, i32
  }
  func.func @transform_2(%arg0: i32, %arg1: i32, %arg2: i32) -> (i32, i32) {
    %c0_i32 = arith.constant 0 : i32
    return %arg0, %arg1 : i32, i32
  }
}

</mosaic_0001>

<bundles_post_ra>
// kernel: tpu_custom_call.1
= control target key start
LH: loop header
LB: loop body
LE: loop exit
PB: predicated region body
PF: predicated region fallthrough
CT: control target
= control target key end

     0   :  { %7 = vsyncpa [#allocation4], 0  ;;  %s2227_s0 = inlined_call_operand.hbm [shape: bf16[512,256], index: 0, kind: input, shape index: {}]   ;;  %s2228_s1 = inlined_call_operand.hbm [shape: bf16[256,128], index: 1, kind: input, shape index: {}]   ;;  %s2229_s2 = inlined_call_operand.hbm [shape: bf16[512,128], index: 2, kind: output, shape index: {}]  }
   0x1   :  { %8 = vsyncpa [#allocation7], 0 }
   0x2   :  { %9 = vsyncpa [#allocation5], 0  ;;  %s2130_s9 = smov [#allocation3]   ;;  %s2058_s13 = scalar_lea.hbm %s2227_s0, 8192 }
   0x3   :  { %s15_s10 = sshll.u32 %s2130_s9, 4  ;;  %p2059_p0 = scmp.ne.s32.totalorder %s2227_s0, %s2058_s13  ;;  %s16_s10 = int_to_ptr.vmem [resolvable:$true] %s15_s10 }
   0x4   :  { %p2062_p1 = scmp.lt.u32.totalorder %s2058_s13, %s2227_s0 }
   0x6   :  { %p2064_p2 = pnand %p2062_p1, %p2059_p0 }
   0x8   :  { %2067 = shalt.err (!%p2064_p2)
}
   0x9   :  { %s2068_s18 = scalar_lea.vmem %s16_s10, 8192  ;;  %p2073_p4 = scmp.lt.s32.totalorder %s16_s10, %s16_s10 }
   0xa   :  { %p2069_p3 = scmp.ne.s32.totalorder %s16_s10, %s2068_s18  ;;  %p2074_p5 = scmp.lt.s32.totalorder %s2068_s18, %s2068_s18 }
   0xc   :  { %p2075_p6 = por %p2074_p5, %p2073_p4 }
   0xe   :  { %p2076_p7 = pnand %p2075_p6, %p2069_p3 }
  0x10   :  { %2079 = shalt.err (!%p2076_p7)
}
  0x11   :  { %s2131_s19 = smov 128   ;;  %s2132_s20 = smov 8  }
  0x12   :  { %21 = dma.hbm_to_vmem [thread:$0]  %s2227_s0, 8192, %s16_s10, [#allocation4], %s2131_s19, %s2131_s19, %s2132_s20  }
  0x13   :  { %s2133_s23 = smov [#allocation6]   ;;  %s2080_s27 = scalar_lea.hbm %s2228_s1, 2048 }
  0x14   :  { %s27_s24 = sshll.u32 %s2133_s23, 4  ;;  %p2081_p8 = scmp.ne.s32.totalorder %s2228_s1, %s2080_s27  ;;  %s28_s24 = int_to_ptr.vmem [resolvable:$true] %s27_s24 }
  0x15   :  { %p2084_p9 = scmp.lt.u32.totalorder %s2080_s27, %s2228_s1 }
  0x17   :  { %p2086_p10 = pnand %p2084_p9, %p2081_p8 }
  0x19   :  { %2089 = shalt.err (!%p2086_p10)
}
  0x1a   :  { %s2090_s4 = scalar_lea.vmem %s28_s24, 2048  ;;  %p2095_p12 = scmp.lt.s32.totalorder %s28_s24, %s28_s24 }
  0x1b   :  { %p2091_p11 = scmp.ne.s32.totalorder %s28_s24, %s2090_s4  ;;  %p2096_p13 = scmp.lt.s32.totalorder %s2090_s4, %s2090_s4 }
  0x1d   :  { %p2097_p0 = por %p2096_p13, %p2095_p12 }
  0x1f   :  { %p2098_p1 = pnand %p2097_p0, %p2091_p11 }
  0x21   :  { %2101 = shalt.err (!%p2098_p1)
}
  0x22   :  { %s2134_s0 = smov 64   ;;  %s2135_s5 = smov 4  }
  0x23   :  { %33 = dma.hbm_to_vmem [thread:$0]  %s2228_s1, 2048, %s28_s24, [#allocation7], %s2134_s0, %s2134_s0, %s2135_s5  }
  0x24   :  { %2124 = dma.done.wait [#allocation4], 8192  }
  0x25   :  { %2125 = vsyncadd [#allocation4], 4294959104 }
  0x26   :  { %2126 = dma.done.wait [#allocation7], 2048  }
  0x27   :  { %2127 = vsyncadd [#allocation7], 4294965248  ;;  %v2136_v0 = vmov 0   ;;  %v1946_v1 = vld [vmem:[#allocation6] sm:$0xff]   ;;  %v1947_v2 = vld [vmem:[#allocation6 + $0x8] sm:$0xff]   ;;  %s2137_s1 = smov [#allocation8]  }
  0x28   :  { %685 = vmatprep.subr.bf16.mxu0 %v2136_v0  ;;  %1906 = vmatprep.subr.bf16.mxu1 %v2136_v0  ;;  %v1948_v3 = vld [vmem:[#allocation6 + $0x10] sm:$0xff]   ;;  %v1949_v4 = vld [vmem:[#allocation6 + $0x18] sm:$0xff]   ;;  %v1950_v5 = vld [vmem:[#allocation6 + $0x20] sm:$0xff]   ;;  %s1494_s8 = sshll.u32 %s2137_s1, 4  ;;  %s1495_s8 = int_to_ptr.vmem [resolvable:$true] %s1494_s8 }
  0x29   :  { %686 = vmatpush1.bf16.msra.mxu0 %v1946_v1  ;;  %1922 = vmatpush1.bf16.msra.mxu1 %v1946_v1  ;;  %v1964_v6 = vld [vmem:[#allocation3 + $0x4] ss:$8 sps:$4 sm:$0xff]   ;;  %v1952_v9 = vld [vmem:[#allocation6 + $0x30] sm:$0xff]   ;;  %v1953_v10 = vld [vmem:[#allocation6 + $0x38] sm:$0xff]   ;;  %s2102_s9 = scalar_lea.vmem %s1495_s8, 4096  ;;  %p2107_p3 = scmp.lt.s32.totalorder %s1495_s8, %s1495_s8 }
  0x2a   :  { %687 = vmatprep.subr.bf16.mxu0 %v2136_v0  ;;  %1907 = vmatprep.subr.bf16.mxu1 %v2136_v0  ;;  %v1951_v7 = vld [vmem:[#allocation6 + $0x28] sm:$0xff]   ;;  %v1954_v11 = vld [vmem:[#allocation6 + $0x40] sm:$0xff]   ;;  %v1956_v13 = vld [vmem:[#allocation6 + $0x50] sm:$0xff]   ;;  %p2103_p2 = scmp.ne.s32.totalorder %s1495_s8, %s2102_s9  ;;  %p2108_p4 = scmp.lt.s32.totalorder %s2102_s9, %s2102_s9 }
  0x2b   :  { %v1967_v8 = vld [vmem:[#allocation3 + $0x104] ss:$8 sps:$4 sm:$0xff]   ;;  %717 = vmatprep.mubr.bf16.mxu0 %v1964_v6  ;;  %v1957_v14 = vld [vmem:[#allocation6 + $0x58] sm:$0xff]   ;;  %v1960_v17 = vld [vmem:[#allocation6 + $0x70] sm:$0xff]  }
  0x2c   :  { %845 = vmatprep.mubr.bf16.mxu1 %v1967_v8  ;;  %v1955_v12 = vld [vmem:[#allocation6 + $0x48] sm:$0xff]   ;;  %v1958_v15 = vld [vmem:[#allocation6 + $0x60] sm:$0xff]   ;;  %v1961_v18 = vld [vmem:[#allocation6 + $0x78] sm:$0xff]   ;;  %p2109_p5 = por %p2108_p4, %p2107_p3 }
  0x2d   :  { %688 = vmatpush1.bf16.msra.mxu0 %v1947_v2  ;;  %1923 = vmatpush1.bf16.msra.mxu1 %v1947_v2  ;;  %v1959_v16 = vld [vmem:[#allocation6 + $0x68] sm:$0xff]   ;;  %v1968_v21 = vld [vmem:[#allocation3 + $0x14] ss:$8 sps:$4 sm:$0xff]   ;;  %v1972_v23 = vld [vmem:[#allocation3 + $0x10] ss:$8 sps:$4 sm:$0xff]  }
  0x2e   :  { %689 = vmatprep.subr.bf16.mxu0 %v2136_v0  ;;  %1908 = vmatprep.subr.bf16.mxu1 %v2136_v0  ;;  %v1962_v19 = vld [vmem:[#allocation3] ss:$8 sps:$4 sm:$0xff]   ;;  %v1970_v22 = vld [vmem:[#allocation3 + $0x114] ss:$8 sps:$4 sm:$0xff]   ;;  %v1973_v24 = vld [vmem:[#allocation3 + $0x110] ss:$8 sps:$4 sm:$0xff]   ;;  %p2110_p6 = pnand %p2109_p5, %p2103_p2 }
  0x2f   :  { %v1965_v20 = vld [vmem:[#allocation3 + $0x100] ss:$8 sps:$4 sm:$0xff]   ;;  %v1974_v25 = vld [vmem:[#allocation3 + $0x24] ss:$8 sps:$4 sm:$0xff]   ;;  %v1980_v29 = vld [vmem:[#allocation3 + $0x34] ss:$8 sps:$4 sm:$0xff]  }
  0x30   :  { %v1976_v26 = vld [vmem:[#allocation3 + $0x124] ss:$8 sps:$4 sm:$0xff]   ;;  %v1978_v27 = vld [vmem:[#allocation3 + $0x20] ss:$8 sps:$4 sm:$0xff]   ;;  %v1982_v30 = vld [vmem:[#allocation3 + $0x134] ss:$8 sps:$4 sm:$0xff]  }
  0x31   :  { %690 = vmatpush1.bf16.msra.mxu0 %v1948_v3  ;;  %1924 = vmatpush1.bf16.msra.mxu1 %v1948_v3  ;;  %v1979_v28 = vld [vmem:[#allocation3 + $0x120] ss:$8 sps:$4 sm:$0xff]   ;;  %v1984_v31 = vld [vmem:[#allocation3 + $0x30] ss:$8 sps:$4 sm:$0xff]   ;;  %v1986_v33 = vld [vmem:[#allocation3 + $0x44] ss:$8 sps:$4 sm:$0xff]  }
  0x32   :  { %691 = vmatprep.subr.bf16.mxu0 %v2136_v0  ;;  %1909 = vmatprep.subr.bf16.mxu1 %v2136_v0  ;;  %v1985_v32 = vld [vmem:[#allocation3 + $0x130] ss:$8 sps:$4 sm:$0xff]   ;;  %v1988_v34 = vld [vmem:[#allocation3 + $0x144] ss:$8 sps:$4 sm:$0xff]   ;;  %v1990_v35 = vld [vmem:[#allocation3 + $0x40] ss:$8 sps:$4 sm:$0xff]  }
  0x33   :  { %v1991_v36 = vld [vmem:[#allocation3 + $0x140] ss:$8 sps:$4 sm:$0xff]   ;;  %v1992_v37 = vld [vmem:[#allocation3 + $0x54] ss:$8 sps:$4 sm:$0xff]   ;;  %v1996_v39 = vld [vmem:[#allocation3 + $0x50] ss:$8 sps:$4 sm:$0xff]  }
  0x34   :  { %v1994_v38 = vld [vmem:[#allocation3 + $0x154] ss:$8 sps:$4 sm:$0xff]   ;;  %v1997_v40 = vld [vmem:[#allocation3 + $0x150] ss:$8 sps:$4 sm:$0xff]   ;;  %v1998_v41 = vld [vmem:[#allocation3 + $0x64] ss:$8 sps:$4 sm:$0xff]  }
  0x35   :  { %692 = vmatpush1.bf16.msra.mxu0 %v1949_v4  ;;  %1925 = vmatpush1.bf16.msra.mxu1 %v1949_v4  ;;  %v2000_v42 = vld [vmem:[#allocation3 + $0x164] ss:$8 sps:$4 sm:$0xff]   ;;  %v2002_v43 = vld [vmem:[#allocation3 + $0x60] ss:$8 sps:$4 sm:$0xff]   ;;  %v2004_v45 = vld [vmem:[#allocation3 + $0x74] ss:$8 sps:$4 sm:$0xff]  }
  0x36   :  { %693 = vmatprep.subr.bf16.mxu0 %v2136_v0  ;;  %1910 = vmatprep.subr.bf16.mxu1 %v2136_v0  ;;  %v2003_v44 = vld [vmem:[#allocation3 + $0x160] ss:$8 sps:$4 sm:$0xff]   ;;  %v2006_v46 = vld [vmem:[#allocation3 + $0x174] ss:$8 sps:$4 sm:$0xff]   ;;  %v2008_v47 = vld [vmem:[#allocation3 + $0x70] ss:$8 sps:$4 sm:$0xff]  }
  0x37   :  { %v2009_v48 = vld [vmem:[#allocation3 + $0x170] ss:$8 sps:$4 sm:$0xff]   ;;  %v2010_v49 = vld [vmem:[#allocation3 + $0x84] ss:$8 sps:$4 sm:$0xff]   ;;  %v2014_v51 = vld [vmem:[#allocation3 + $0x80] ss:$8 sps:$4 sm:$0xff]  }
  0x38   :  { %v2012_v50 = vld [vmem:[#allocation3 + $0x184] ss:$8 sps:$4 sm:$0xff]   ;;  %v2015_v52 = vld [vmem:[#allocation3 + $0x180] ss:$8 sps:$4 sm:$0xff]   ;;  %v2016_v53 = vld [vmem:[#allocation3 + $0x94] ss:$8 sps:$4 sm:$0xff]  }
  0x39   :  { %694 = vmatpush1.bf16.msra.mxu0 %v1950_v5  ;;  %1926 = vmatpush1.bf16.msra.mxu1 %v1950_v5  ;;  %v2018_v54 = vld [vmem:[#allocation3 + $0x194] ss:$8 sps:$4 sm:$0xff]   ;;  %v2020_v55 = vld [vmem:[#allocation3 + $0x90] ss:$8 sps:$4 sm:$0xff]   ;;  %v2022_v57 = vld [vmem:[#allocation3 + $0xa4] ss:$8 sps:$4 sm:$0xff]  }
  0x3a   :  { %695 = vmatprep.subr.bf16.mxu0 %v2136_v0  ;;  %1911 = vmatprep.subr.bf16.mxu1 %v2136_v0  ;;  %v2021_v56 = vld [vmem:[#allocation3 + $0x190] ss:$8 sps:$4 sm:$0xff]   ;;  %v2024_v58 = vld [vmem:[#allocation3 + $0x1a4] ss:$8 sps:$4 sm:$0xff]   ;;  %v2026_v59 = vld [vmem:[#allocation3 + $0xa0] ss:$8 sps:$4 sm:$0xff]  }
  0x3b   :  { %v2027_v60 = vld [vmem:[#allocation3 + $0x1a0] ss:$8 sps:$4 sm:$0xff]   ;;  %v2028_v61 = vld [vmem:[#allocation3 + $0xb4] ss:$8 sps:$4 sm:$0xff]   ;;  %v2032_v63 = vld [vmem:[#allocation3 + $0xb0] ss:$8 sps:$4 sm:$0xff]  }
  0x3c   :  { %v2030_v62 = vld [vmem:[#allocation3 + $0x1b4] ss:$8 sps:$4 sm:$0xff]   ;;  %v2034_v1 = vld [vmem:[#allocation3 + $0xc4] ss:$8 sps:$4 sm:$0xff]   ;;  %v2038_v3 = vld [vmem:[#allocation3 + $0xc0] ss:$8 sps:$4 sm:$0xff]  }
  0x3d   :  { %696 = vmatpush1.bf16.msra.mxu0 %v1951_v7  ;;  %1927 = vmatpush1.bf16.msra.mxu1 %v1951_v7  ;;  %v2036_v2 = vld [vmem:[#allocation3 + $0x1c4] ss:$8 sps:$4 sm:$0xff]   ;;  %v2039_v4 = vld [vmem:[#allocation3 + $0x1c0] ss:$8 sps:$4 sm:$0xff]   ;;  %v2040_v5 = vld [vmem:[#allocation3 + $0xd4] ss:$8 sps:$4 sm:$0xff]  }
  0x3e   :  { %697 = vmatprep.subr.bf16.mxu0 %v2136_v0  ;;  %1912 = vmatprep.subr.bf16.mxu1 %v2136_v0  ;;  %v2042_v6 = vld [vmem:[#allocation3 + $0x1d4] ss:$8 sps:$4 sm:$0xff]   ;;  %v2044_v7 = vld [vmem:[#allocation3 + $0xd0] ss:$8 sps:$4 sm:$0xff]  }
  0x3f   :  { %v2045_v8 = vld [vmem:[#allocation3 + $0x1d0] ss:$8 sps:$4 sm:$0xff]  }
  0x41   :  { %698 = vmatpush1.bf16.msra.mxu0 %v1952_v9  ;;  %1928 = vmatpush1.bf16.msra.mxu1 %v1952_v9  ;;  %v2046_v9 = vld [vmem:[#allocation3 + $0xe4] ss:$8 sps:$4 sm:$0xff]  }
  0x42   :  { %699 = vmatprep.subr.bf16.mxu0 %v2136_v0  ;;  %1913 = vmatprep.subr.bf16.mxu1 %v2136_v0 }
  0x45   :  { %700 = vmatpush1.bf16.msra.mxu0 %v1953_v10  ;;  %1929 = vmatpush1.bf16.msra.mxu1 %v1953_v10  ;;  %v2048_v10 = vld [vmem:[#allocation3 + $0x1e4] ss:$8 sps:$4 sm:$0xff]  }
  0x46   :  { %701 = vmatprep.subr.bf16.mxu0 %v2136_v0  ;;  %1914 = vmatprep.subr.bf16.mxu1 %v2136_v0 }
  0x49   :  { %702 = vmatpush1.bf16.msra.mxu0 %v1954_v11  ;;  %1930 = vmatpush1.bf16.msra.mxu1 %v1954_v11  ;;  %v2050_v11 = vld [vmem:[#allocation3 + $0xe0] ss:$8 sps:$4 sm:$0xff]  }
  0x4a   :  { %703 = vmatprep.subr.bf16.mxu0 %v2136_v0  ;;  %1915 = vmatprep.subr.bf16.mxu1 %v2136_v0 }
  0x4d   :  { %704 = vmatpush1.bf16.msra.mxu0 %v1955_v12  ;;  %1931 = vmatpush1.bf16.msra.mxu1 %v1955_v12  ;;  %v2051_v12 = vld [vmem:[#allocation3 + $0x1e0] ss:$8 sps:$4 sm:$0xff]  }
  0x4e   :  { %705 = vmatprep.subr.bf16.mxu0 %v2136_v0  ;;  %1916 = vmatprep.subr.bf16.mxu1 %v2136_v0 }
  0x51   :  { %706 = vmatpush1.bf16.msra.mxu0 %v1956_v13  ;;  %1932 = vmatpush1.bf16.msra.mxu1 %v1956_v13  ;;  %v2052_v13 = vld [vmem:[#allocation3 + $0xf4] ss:$8 sps:$4 sm:$0xff]  }
  0x52   :  { %707 = vmatprep.subr.bf16.mxu0 %v2136_v0  ;;  %1917 = vmatprep.subr.bf16.mxu1 %v2136_v0 }
  0x55   :  { %708 = vmatpush1.bf16.msra.mxu0 %v1957_v14  ;;  %1933 = vmatpush1.bf16.msra.mxu1 %v1957_v14  ;;  %v2054_v14 = vld [vmem:[#allocation3 + $0x1f4] ss:$8 sps:$4 sm:$0xff]  }
  0x56   :  { %709 = vmatprep.subr.bf16.mxu0 %v2136_v0  ;;  %1918 = vmatprep.subr.bf16.mxu1 %v2136_v0 }
  0x59   :  { %710 = vmatpush1.bf16.msra.mxu0 %v1958_v15  ;;  %1934 = vmatpush1.bf16.msra.mxu1 %v1958_v15  ;;  %v2056_v15 = vld [vmem:[#allocation3 + $0xf0] ss:$8 sps:$4 sm:$0xff]  }
  0x5a   :  { %711 = vmatprep.subr.bf16.mxu0 %v2136_v0  ;;  %1919 = vmatprep.subr.bf16.mxu1 %v2136_v0 }
  0x5d   :  { %712 = vmatpush1.bf16.msra.mxu0 %v1959_v16  ;;  %1935 = vmatpush1.bf16.msra.mxu1 %v1959_v16  ;;  %v2057_v16 = vld [vmem:[#allocation3 + $0x1f0] ss:$8 sps:$4 sm:$0xff]  }
  0x5e   :  { %713 = vmatprep.subr.bf16.mxu0 %v2136_v0  ;;  %1920 = vmatprep.subr.bf16.mxu1 %v2136_v0 }
  0x61   :  { %714 = vmatpush1.bf16.msra.mxu0 %v1960_v17  ;;  %1936 = vmatpush1.bf16.msra.mxu1 %v1960_v17 }
  0x62   :  { %715 = vmatprep.subr.bf16.mxu0 %v2136_v0  ;;  %1921 = vmatprep.subr.bf16.mxu1 %v2136_v0  ;;  %v2033_v0 = vld [vmem:[#allocation3 + $0x1b0] ss:$8 sps:$4 sm:$0xff]  }
  0x65   :  { %716 = vmatpush1.bf16.msra.mxu0 %v1961_v18  ;;  %1937 = vmatpush1.bf16.msra.mxu1 %v1961_v18 }
  0x68   :  { %718 = vmatmul.mubr.bf16.vlgmr.msra.gmra.mrb[0].mxu0 %v1962_v19  ;;  %846 = vmatmul.mubr.bf16.vlgmr.msra.gmra.mrb[0].mxu1 %v1965_v20 }
  0x69   :  { %725 = vmatprep.mubr.bf16.mxu0 %v1968_v21  ;;  %853 = vmatprep.mubr.bf16.mxu1 %v1970_v22 }
  0x70   :  { %726 = vmatmul.mubr.bf16.gmra.mrb[4].mxu0 %v1972_v23  ;;  %854 = vmatmul.mubr.bf16.gmra.mrb[4].mxu1 %v1973_v24 }
  0x71   :  { %733 = vmatprep.mubr.bf16.mxu0 %v1974_v25  ;;  %861 = vmatprep.mubr.bf16.mxu1 %v1976_v26 }
  0x78   :  { %734 = vmatmul.mubr.bf16.gmra.mrb[8].mxu0 %v1978_v27  ;;  %862 = vmatmul.mubr.bf16.gmra.mrb[8].mxu1 %v1979_v28 }
  0x79   :  { %741 = vmatprep.mubr.bf16.mxu0 %v1980_v29  ;;  %869 = vmatprep.mubr.bf16.mxu1 %v1982_v30 }
  0x80   :  { %742 = vmatmul.mubr.bf16.gmra.mrb[12].mxu0 %v1984_v31  ;;  %870 = vmatmul.mubr.bf16.gmra.mrb[12].mxu1 %v1985_v32 }
  0x81   :  { %749 = vmatprep.mubr.bf16.mxu0 %v1986_v33  ;;  %877 = vmatprep.mubr.bf16.mxu1 %v1988_v34 }
  0x88   :  { %750 = vmatmul.mubr.bf16.gmra.mrb[16].mxu0 %v1990_v35  ;;  %878 = vmatmul.mubr.bf16.gmra.mrb[16].mxu1 %v1991_v36 }
  0x89   :  { %757 = vmatprep.mubr.bf16.mxu0 %v1992_v37  ;;  %885 = vmatprep.mubr.bf16.mxu1 %v1994_v38 }
  0x90   :  { %758 = vmatmul.mubr.bf16.gmra.mrb[20].mxu0 %v1996_v39  ;;  %886 = vmatmul.mubr.bf16.gmra.mrb[20].mxu1 %v1997_v40 }
  0x91   :  { %765 = vmatprep.mubr.bf16.mxu0 %v1998_v41  ;;  %893 = vmatprep.mubr.bf16.mxu1 %v2000_v42 }
  0x98   :  { %766 = vmatmul.mubr.bf16.gmra.mrb[24].mxu0 %v2002_v43  ;;  %894 = vmatmul.mubr.bf16.gmra.mrb[24].mxu1 %v2003_v44 }
  0x99   :  { %773 = vmatprep.mubr.bf16.mxu0 %v2004_v45  ;;  %901 = vmatprep.mubr.bf16.mxu1 %v2006_v46 }
  0xa0   :  { %774 = vmatmul.mubr.bf16.gmra.mrb[28].mxu0 %v2008_v47  ;;  %902 = vmatmul.mubr.bf16.gmra.mrb[28].mxu1 %v2009_v48 }
  0xa1   :  { %781 = vmatprep.mubr.bf16.mxu0 %v2010_v49  ;;  %909 = vmatprep.mubr.bf16.mxu1 %v2012_v50 }
  0xa8   :  { %782 = vmatmul.mubr.bf16.gmra.mrb[32].mxu0 %v2014_v51  ;;  %910 = vmatmul.mubr.bf16.gmra.mrb[32].mxu1 %v2015_v52 }
  0xa9   :  { %789 = vmatprep.mubr.bf16.mxu0 %v2016_v53  ;;  %917 = vmatprep.mubr.bf16.mxu1 %v2018_v54 }
  0xb0   :  { %790 = vmatmul.mubr.bf16.gmra.mrb[36].mxu0 %v2020_v55  ;;  %918 = vmatmul.mubr.bf16.gmra.mrb[36].mxu1 %v2021_v56 }
  0xb1   :  { %797 = vmatprep.mubr.bf16.mxu0 %v2022_v57  ;;  %925 = vmatprep.mubr.bf16.mxu1 %v2024_v58 }
  0xb8   :  { %798 = vmatmul.mubr.bf16.gmra.mrb[40].mxu0 %v2026_v59  ;;  %926 = vmatmul.mubr.bf16.gmra.mrb[40].mxu1 %v2027_v60 }
  0xb9   :  { %805 = vmatprep.mubr.bf16.mxu0 %v2028_v61  ;;  %933 = vmatprep.mubr.bf16.mxu1 %v2030_v62 }
  0xc0   :  { %806 = vmatmul.mubr.bf16.gmra.mrb[44].mxu0 %v2032_v63  ;;  %934 = vmatmul.mubr.bf16.gmra.mrb[44].mxu1 %v2033_v0 }
  0xc1   :  { %813 = vmatprep.mubr.bf16.mxu0 %v2034_v1  ;;  %941 = vmatprep.mubr.bf16.mxu1 %v2036_v2 }
  0xc8   :  { %814 = vmatmul.mubr.bf16.gmra.mrb[48].mxu0 %v2038_v3  ;;  %942 = vmatmul.mubr.bf16.gmra.mrb[48].mxu1 %v2039_v4 }
  0xc9   :  { %821 = vmatprep.mubr.bf16.mxu0 %v2040_v5  ;;  %949 = vmatprep.mubr.bf16.mxu1 %v2042_v6 }
  0xd0   :  { %822 = vmatmul.mubr.bf16.gmra.mrb[52].mxu0 %v2044_v7  ;;  %950 = vmatmul.mubr.bf16.gmra.mrb[52].mxu1 %v2045_v8 }
  0xd1   :  { %829 = vmatprep.mubr.bf16.mxu0 %v2046_v9  ;;  %957 = vmatprep.mubr.bf16.mxu1 %v2048_v10 }
  0xd8   :  { %830 = vmatmul.mubr.bf16.gmra.mrb[56].mxu0 %v2050_v11  ;;  %958 = vmatmul.mubr.bf16.gmra.mrb[56].mxu1 %v2051_v12 }
  0xd9   :  { %837 = vmatprep.mubr.bf16.mxu0 %v2052_v13  ;;  %965 = vmatprep.mubr.bf16.mxu1 %v2054_v14 }
  0xe0   :  { %838 = vmatmul.mubr.bf16.gmra.mrb[60].mxu0 %v2056_v15  ;;  %966 = vmatmul.mubr.bf16.gmra.mrb[60].mxu1 %v2057_v16 }
 0x13b   :  { %v719_v17 = vpop.f32.mrb[0].mxu0  ;;  %v847_v18 = vpop.f32.mrb[0].mxu1 }
 0x13c   :  { %v721_v19 = vpop.f32.mrb[1].mxu0  ;;  %v849_v20 = vpop.f32.mrb[1].mxu1 }
 0x13d   :  { %v722_v21 = vpop.f32.mrb[2].mxu0  ;;  %v850_v22 = vpop.f32.mrb[2].mxu1 }
 0x13e   :  { %v1718_v23 = vpack.c.bf16 %v722_v21, %v719_v17  ;;  %v1798_v24 = vpack.c.bf16 %v850_v22, %v847_v18  ;;  %v724_v25 = vpop.f32.mrb[3].mxu0  ;;  %v852_v26 = vpop.f32.mrb[3].mxu1 }
 0x140   :  { %1719 = vst [vmem:[#allocation8] sm:$0xff] %v1718_v23   ;;  %1890 = vst [vmem:[#allocation8 + $0x80] sm:$0xff] %v1798_v24  }
 0x143   :  { %v727_v27 = vpop.f32.mrb[4].mxu0  ;;  %v855_v28 = vpop.f32.mrb[4].mxu1 }
 0x144   :  { %v729_v29 = vpop.f32.mrb[5].mxu0  ;;  %v857_v30 = vpop.f32.mrb[5].mxu1 }
 0x145   :  { %v730_v31 = vpop.f32.mrb[6].mxu0  ;;  %v858_v32 = vpop.f32.mrb[6].mxu1 }
 0x146   :  { %v1723_v33 = vpack.c.bf16 %v730_v31, %v727_v27  ;;  %v1803_v34 = vpack.c.bf16 %v858_v32, %v855_v28  ;;  %v732_v35 = vpop.f32.mrb[7].mxu0  ;;  %v860_v36 = vpop.f32.mrb[7].mxu1 }
 0x148   :  { %1875 = vst [vmem:[#allocation8 + $0x8] sm:$0xff] %v1723_v33   ;;  %1891 = vst [vmem:[#allocation8 + $0x88] sm:$0xff] %v1803_v34  }
 0x14b   :  { %v735_v37 = vpop.f32.mrb[8].mxu0  ;;  %v863_v38 = vpop.f32.mrb[8].mxu1 }
 0x14c   :  { %v737_v39 = vpop.f32.mrb[9].mxu0  ;;  %v865_v40 = vpop.f32.mrb[9].mxu1 }
 0x14d   :  { %v738_v41 = vpop.f32.mrb[10].mxu0  ;;  %v866_v42 = vpop.f32.mrb[10].mxu1 }
 0x14e   :  { %v1728_v43 = vpack.c.bf16 %v738_v41, %v735_v37  ;;  %v1808_v44 = vpack.c.bf16 %v866_v42, %v863_v38  ;;  %v740_v45 = vpop.f32.mrb[11].mxu0  ;;  %v868_v46 = vpop.f32.mrb[11].mxu1 }
 0x150   :  { %1876 = vst [vmem:[#allocation8 + $0x10] sm:$0xff] %v1728_v43   ;;  %1892 = vst [vmem:[#allocation8 + $0x90] sm:$0xff] %v1808_v44  }
 0x153   :  { %v743_v47 = vpop.f32.mrb[12].mxu0  ;;  %v871_v48 = vpop.f32.mrb[12].mxu1 }
 0x154   :  { %v745_v49 = vpop.f32.mrb[13].mxu0  ;;  %v873_v50 = vpop.f32.mrb[13].mxu1 }
 0x155   :  { %v746_v51 = vpop.f32.mrb[14].mxu0  ;;  %v874_v52 = vpop.f32.mrb[14].mxu1 }
 0x156   :  { %v1733_v53 = vpack.c.bf16 %v746_v51, %v743_v47  ;;  %v1813_v54 = vpack.c.bf16 %v874_v52, %v871_v48  ;;  %v748_v55 = vpop.f32.mrb[15].mxu0  ;;  %v876_v56 = vpop.f32.mrb[15].mxu1 }
 0x158   :  { %1877 = vst [vmem:[#allocation8 + $0x18] sm:$0xff] %v1733_v53   ;;  %1893 = vst [vmem:[#allocation8 + $0x98] sm:$0xff] %v1813_v54  }
 0x15b   :  { %v751_v57 = vpop.f32.mrb[16].mxu0  ;;  %v879_v58 = vpop.f32.mrb[16].mxu1 }
 0x15c   :  { %v753_v59 = vpop.f32.mrb[17].mxu0  ;;  %v881_v60 = vpop.f32.mrb[17].mxu1 }
 0x15d   :  { %v754_v61 = vpop.f32.mrb[18].mxu0  ;;  %v882_v62 = vpop.f32.mrb[18].mxu1 }
 0x15e   :  { %v1738_v63 = vpack.c.bf16 %v754_v61, %v751_v57  ;;  %v1818_v0 = vpack.c.bf16 %v882_v62, %v879_v58  ;;  %v756_v1 = vpop.f32.mrb[19].mxu0  ;;  %v884_v2 = vpop.f32.mrb[19].mxu1 }
 0x160   :  { %1878 = vst [vmem:[#allocation8 + $0x20] sm:$0xff] %v1738_v63   ;;  %1894 = vst [vmem:[#allocation8 + $0xa0] sm:$0xff] %v1818_v0  }
 0x163   :  { %v759_v3 = vpop.f32.mrb[20].mxu0  ;;  %v887_v4 = vpop.f32.mrb[20].mxu1 }
 0x164   :  { %v761_v5 = vpop.f32.mrb[21].mxu0  ;;  %v889_v6 = vpop.f32.mrb[21].mxu1 }
 0x165   :  { %v762_v7 = vpop.f32.mrb[22].mxu0  ;;  %v890_v8 = vpop.f32.mrb[22].mxu1 }
 0x166   :  { %v1743_v9 = vpack.c.bf16 %v762_v7, %v759_v3  ;;  %v1823_v10 = vpack.c.bf16 %v890_v8, %v887_v4  ;;  %v764_v11 = vpop.f32.mrb[23].mxu0  ;;  %v892_v12 = vpop.f32.mrb[23].mxu1 }
 0x168   :  { %1879 = vst [vmem:[#allocation8 + $0x28] sm:$0xff] %v1743_v9   ;;  %1895 = vst [vmem:[#allocation8 + $0xa8] sm:$0xff] %v1823_v10  }
 0x16b   :  { %v767_v13 = vpop.f32.mrb[24].mxu0  ;;  %v895_v14 = vpop.f32.mrb[24].mxu1 }
 0x16c   :  { %v769_v15 = vpop.f32.mrb[25].mxu0  ;;  %v897_v16 = vpop.f32.mrb[25].mxu1 }
 0x16d   :  { %v770_v17 = vpop.f32.mrb[26].mxu0  ;;  %v898_v18 = vpop.f32.mrb[26].mxu1 }
 0x16e   :  { %v1748_v19 = vpack.c.bf16 %v770_v17, %v767_v13  ;;  %v1828_v20 = vpack.c.bf16 %v898_v18, %v895_v14  ;;  %v772_v21 = vpop.f32.mrb[27].mxu0  ;;  %v900_v22 = vpop.f32.mrb[27].mxu1 }
 0x170   :  { %1880 = vst [vmem:[#allocation8 + $0x30] sm:$0xff] %v1748_v19   ;;  %1896 = vst [vmem:[#allocation8 + $0xb0] sm:$0xff] %v1828_v20  }
 0x173   :  { %v775_v23 = vpop.f32.mrb[28].mxu0  ;;  %v903_v24 = vpop.f32.mrb[28].mxu1 }
 0x174   :  { %v777_v25 = vpop.f32.mrb[29].mxu0  ;;  %v905_v26 = vpop.f32.mrb[29].mxu1 }
 0x175   :  { %v778_v27 = vpop.f32.mrb[30].mxu0  ;;  %v906_v28 = vpop.f32.mrb[30].mxu1 }
 0x176   :  { %v1753_v29 = vpack.c.bf16 %v778_v27, %v775_v23  ;;  %v1833_v30 = vpack.c.bf16 %v906_v28, %v903_v24  ;;  %v780_v31 = vpop.f32.mrb[31].mxu0  ;;  %v908_v32 = vpop.f32.mrb[31].mxu1 }
 0x178   :  { %1881 = vst [vmem:[#allocation8 + $0x38] sm:$0xff] %v1753_v29   ;;  %1897 = vst [vmem:[#allocation8 + $0xb8] sm:$0xff] %v1833_v30  }
 0x17b   :  { %v783_v33 = vpop.f32.mrb[32].mxu0  ;;  %v911_v34 = vpop.f32.mrb[32].mxu1 }
 0x17c   :  { %v785_v35 = vpop.f32.mrb[33].mxu0  ;;  %v913_v36 = vpop.f32.mrb[33].mxu1 }
 0x17d   :  { %v786_v37 = vpop.f32.mrb[34].mxu0  ;;  %v914_v38 = vpop.f32.mrb[34].mxu1 }
 0x17e   :  { %v1758_v39 = vpack.c.bf16 %v786_v37, %v783_v33  ;;  %v1838_v40 = vpack.c.bf16 %v914_v38, %v911_v34  ;;  %v788_v41 = vpop.f32.mrb[35].mxu0  ;;  %v916_v42 = vpop.f32.mrb[35].mxu1 }
 0x180   :  { %1882 = vst [vmem:[#allocation8 + $0x40] sm:$0xff] %v1758_v39   ;;  %1898 = vst [vmem:[#allocation8 + $0xc0] sm:$0xff] %v1838_v40  }
 0x183   :  { %v791_v43 = vpop.f32.mrb[36].mxu0  ;;  %v919_v44 = vpop.f32.mrb[36].mxu1 }
 0x184   :  { %v793_v45 = vpop.f32.mrb[37].mxu0  ;;  %v921_v46 = vpop.f32.mrb[37].mxu1 }
 0x185   :  { %v794_v47 = vpop.f32.mrb[38].mxu0  ;;  %v922_v48 = vpop.f32.mrb[38].mxu1 }
 0x186   :  { %v1763_v49 = vpack.c.bf16 %v794_v47, %v791_v43  ;;  %v1843_v50 = vpack.c.bf16 %v922_v48, %v919_v44  ;;  %v796_v51 = vpop.f32.mrb[39].mxu0  ;;  %v924_v52 = vpop.f32.mrb[39].mxu1 }
 0x188   :  { %1883 = vst [vmem:[#allocation8 + $0x48] sm:$0xff] %v1763_v49   ;;  %1899 = vst [vmem:[#allocation8 + $0xc8] sm:$0xff] %v1843_v50  }
 0x18b   :  { %v799_v53 = vpop.f32.mrb[40].mxu0  ;;  %v927_v54 = vpop.f32.mrb[40].mxu1 }
 0x18c   :  { %v801_v55 = vpop.f32.mrb[41].mxu0  ;;  %v929_v56 = vpop.f32.mrb[41].mxu1 }
 0x18d   :  { %v802_v57 = vpop.f32.mrb[42].mxu0  ;;  %v930_v58 = vpop.f32.mrb[42].mxu1 }
 0x18e   :  { %v1768_v59 = vpack.c.bf16 %v802_v57, %v799_v53  ;;  %v1848_v60 = vpack.c.bf16 %v930_v58, %v927_v54  ;;  %v804_v61 = vpop.f32.mrb[43].mxu0  ;;  %v932_v62 = vpop.f32.mrb[43].mxu1 }
 0x190   :  { %1884 = vst [vmem:[#allocation8 + $0x50] sm:$0xff] %v1768_v59   ;;  %1900 = vst [vmem:[#allocation8 + $0xd0] sm:$0xff] %v1848_v60  }
 0x193   :  { %v807_v63 = vpop.f32.mrb[44].mxu0  ;;  %v935_v0 = vpop.f32.mrb[44].mxu1 }
 0x194   :  { %v809_v1 = vpop.f32.mrb[45].mxu0  ;;  %v937_v2 = vpop.f32.mrb[45].mxu1 }
 0x195   :  { %v810_v3 = vpop.f32.mrb[46].mxu0  ;;  %v938_v4 = vpop.f32.mrb[46].mxu1 }
 0x196   :  { %v1773_v5 = vpack.c.bf16 %v810_v3, %v807_v63  ;;  %v1853_v6 = vpack.c.bf16 %v938_v4, %v935_v0  ;;  %v812_v7 = vpop.f32.mrb[47].mxu0  ;;  %v940_v8 = vpop.f32.mrb[47].mxu1 }
 0x198   :  { %1885 = vst [vmem:[#allocation8 + $0x58] sm:$0xff] %v1773_v5   ;;  %1901 = vst [vmem:[#allocation8 + $0xd8] sm:$0xff] %v1853_v6  }
 0x19b   :  { %v815_v9 = vpop.f32.mrb[48].mxu0  ;;  %v943_v10 = vpop.f32.mrb[48].mxu1 }
 0x19c   :  { %v817_v11 = vpop.f32.mrb[49].mxu0  ;;  %v945_v12 = vpop.f32.mrb[49].mxu1 }
 0x19d   :  { %v818_v13 = vpop.f32.mrb[50].mxu0  ;;  %v946_v14 = vpop.f32.mrb[50].mxu1 }
 0x19e   :  { %v1778_v15 = vpack.c.bf16 %v818_v13, %v815_v9  ;;  %v1858_v16 = vpack.c.bf16 %v946_v14, %v943_v10  ;;  %v820_v17 = vpop.f32.mrb[51].mxu0  ;;  %v948_v18 = vpop.f32.mrb[51].mxu1 }
 0x1a0   :  { %1886 = vst [vmem:[#allocation8 + $0x60] sm:$0xff] %v1778_v15   ;;  %1902 = vst [vmem:[#allocation8 + $0xe0] sm:$0xff] %v1858_v16  }
 0x1a3   :  { %v823_v19 = vpop.f32.mrb[52].mxu0  ;;  %v951_v20 = vpop.f32.mrb[52].mxu1 }
 0x1a4   :  { %v825_v21 = vpop.f32.mrb[53].mxu0  ;;  %v953_v22 = vpop.f32.mrb[53].mxu1 }
 0x1a5   :  { %v826_v23 = vpop.f32.mrb[54].mxu0  ;;  %v954_v24 = vpop.f32.mrb[54].mxu1 }
 0x1a6   :  { %v1783_v25 = vpack.c.bf16 %v826_v23, %v823_v19  ;;  %v1863_v26 = vpack.c.bf16 %v954_v24, %v951_v20  ;;  %v828_v27 = vpop.f32.mrb[55].mxu0  ;;  %v956_v28 = vpop.f32.mrb[55].mxu1 }
 0x1a8   :  { %1887 = vst [vmem:[#allocation8 + $0x68] sm:$0xff] %v1783_v25   ;;  %1903 = vst [vmem:[#allocation8 + $0xe8] sm:$0xff] %v1863_v26  }
 0x1ab   :  { %v831_v29 = vpop.f32.mrb[56].mxu0  ;;  %v959_v30 = vpop.f32.mrb[56].mxu1 }
 0x1ac   :  { %v833_v31 = vpop.f32.mrb[57].mxu0  ;;  %v961_v32 = vpop.f32.mrb[57].mxu1 }
 0x1ad   :  { %v834_v33 = vpop.f32.mrb[58].mxu0  ;;  %v962_v34 = vpop.f32.mrb[58].mxu1 }
 0x1ae   :  { %v1788_v35 = vpack.c.bf16 %v834_v33, %v831_v29  ;;  %v1868_v36 = vpack.c.bf16 %v962_v34, %v959_v30  ;;  %v836_v37 = vpop.f32.mrb[59].mxu0  ;;  %v964_v38 = vpop.f32.mrb[59].mxu1 }
 0x1b0   :  { %1888 = vst [vmem:[#allocation8 + $0x70] sm:$0xff] %v1788_v35   ;;  %1904 = vst [vmem:[#allocation8 + $0xf0] sm:$0xff] %v1868_v36  }
 0x1b3   :  { %v839_v39 = vpop.f32.mrb[60].mxu0  ;;  %v967_v40 = vpop.f32.mrb[60].mxu1 }
 0x1b4   :  { %v841_v41 = vpop.f32.mrb[61].mxu0  ;;  %v969_v42 = vpop.f32.mrb[61].mxu1 }
 0x1b5   :  { %v842_v43 = vpop.f32.mrb[62].mxu0  ;;  %v970_v44 = vpop.f32.mrb[62].mxu1 }
 0x1b6   :  { %v1793_v45 = vpack.c.bf16 %v842_v43, %v839_v39  ;;  %v1873_v46 = vpack.c.bf16 %v970_v44, %v967_v40  ;;  %v844_v47 = vpop.f32.mrb[63].mxu0  ;;  %v972_v48 = vpop.f32.mrb[63].mxu1 }
 0x1b8   :  { %1889 = vst [vmem:[#allocation8 + $0x78] sm:$0xff] %v1793_v45   ;;  %1905 = vst [vmem:[#allocation8 + $0xf8] sm:$0xff] %v1873_v46  }
 0x1b9   :  { %2113 = shalt.err (!%p2110_p6)
}
 0x1ba   :  { %s2114_s12 = scalar_lea.hbm %s2229_s2, 4096 }
 0x1bb   :  { %p2115_p7 = scmp.ne.s32.totalorder %s2229_s2, %s2114_s12  ;;  %p2118_p8 = scmp.lt.u32.totalorder %s2114_s12, %s2229_s2 }
 0x1bd   :  { %p2120_p9 = pnand %p2118_p8, %p2115_p7 }
 0x1bf   :  { %2123 = shalt.err (!%p2120_p9)
}
 0x1c0   :  { %1500 = dma.vmem_to_hbm [thread:$0]  %s1495_s8, 4096, %s2229_s2, [#allocation5], %s2134_s0, %s2134_s0, %s2135_s5  }
 0x1c1   :  { %2128 = dma.done.wait [#allocation5], 4096  }
 0x1c2   :  { %2129 = vsyncadd [#allocation5], 4294963200 }
 0x1c3   :  { %1504 = vsyncpa [#allocation4], 1 }
 0x1c4   :  { %1505 = vsyncpa [#allocation7], 1 }
 0x1c5   :  { %1506 = vsyncpa [#allocation5], 1 }

</bundles_post_ra>
